<compile_context>
chip_gen: v7x
topology: tpu7x:2x2x1
jax: 0.10.0
libtpu: 0.0.40
codegen_flags: <defaults>
</compile_context>

<pallas_src>
import functools

import jax
import jax.numpy as jnp
from jax.experimental import pallas as pl
from jax.experimental.pallas import tpu as pltpu


def _round_up(x, m):
    return ((x + m - 1) // m) * m


def _cdiv(a, b):
    return -(-a // b)


def _binarize(v):
    # Bit-exact with 2*round(clamp((v+1)/2, 0, 1)) - 1 for finite f32 v:
    # the *0.5, clamp and round-half-even all preserve the f32(v+1) > 1 threshold.
    return jnp.where((v + 1.0) > 1.0, 1.0, -1.0)


# --------------------------------------------------------------------------
# Kernels: tiled matmul accumulating directly into the VMEM-resident output
# block; binarized bias initializes the block on the first K step.
# --------------------------------------------------------------------------
def _accumulate(partial, b_ref, o_ref, nk):
    if nk == 1:
        o_ref[...] = partial + b_ref[...]
    else:
        k = pl.program_id(2)

        @pl.when(k == 0)
        def _init():
            o_ref[...] = partial + b_ref[...]

        @pl.when(k > 0)
        def _acc():
            o_ref[...] = o_ref[...] + partial


def _binary_matmul_fused_kernel(x_ref, w_ref, b_ref, o_ref, *, nk):
    # w_ref: raw f32 (tn, tk) weight tile; binarize in-kernel (compare+select,
    # hidden under the weight DMA in the W-streaming-bound regime).
    w_bin = _binarize(w_ref[...]).astype(jnp.float32)
    partial = jax.lax.dot_general(
        x_ref[...], w_bin,
        dimension_numbers=(((1,), (1,)), ((), ())),
        preferred_element_type=jnp.float32,
    )
    _accumulate(partial, b_ref, o_ref, nk)


def _binary_matmul_prebin_kernel(x_ref, wt_ref, b_ref, o_ref, *, nk):
    # wt_ref: pre-binarized bf16 (tk, tn) tile (+/-1 exact); widen to f32 so
    # the matmul stays exact vs the f32 reference.
    w = wt_ref[...].astype(jnp.float32)
    partial = jax.lax.dot_general(
        x_ref[...], w,
        dimension_numbers=(((1,), (0,)), ((), ())),
        preferred_element_type=jnp.float32,
    )
    _accumulate(partial, b_ref, o_ref, nk)


# --------------------------------------------------------------------------
# VMEM budget derived from actual tile bytes (double-buffered pipeline + margin),
# clamped so it works on v5e (16 MiB scoped default) and v7x (64 MiB physical).
# --------------------------------------------------------------------------
def _vmem_limit_bytes(tm, tn, tk, w_bytes_per_elem):
    x_b = tm * tk * 4
    w_b = tn * tk * w_bytes_per_elem
    b_b = tn * 4
    o_b = tm * tn * 4
    need = 2 * (x_b + w_b + b_b + o_b)          # double-buffered in/out
    need = int(need * 1.5) + (2 << 20)          # headroom for in-kernel temps
    return max(16 << 20, min(48 << 20, need))


# --------------------------------------------------------------------------
# Wrapper
# --------------------------------------------------------------------------
@functools.partial(jax.jit, static_argnames=("tm_cap", "tn_cap", "tk_cap"))
def binary_linear(x, weight, bias=None, *, tm_cap=512, tn_cap=512, tk_cap=2048):
    """x: (M, K) f32, weight: (N, K) f32, bias: (N,) f32 or None -> (M, N) f32."""
    M, K = x.shape
    N, K2 = weight.shape
    assert K == K2

    # Sanitize caps to hardware-aligned multiples.
    tm_cap = _round_up(max(tm_cap, 8), 8)
    tn_cap = _round_up(max(tn_cap, 128), 128)
    tk_cap = _round_up(max(tk_cap, 128), 128)

    tm = min(tm_cap, _round_up(M, 8))
    tn = min(tn_cap, _round_up(N, 128))
    rK = _round_up(K, 128)
    tk = min(tk_cap, rK)                       # tk == rK deletes the reduction axis

    # v7x megacore: make sure the parallel (i, j) grid has >= 2 blocks when the
    # shape allows it, so both TensorCores get work.
    if _cdiv(M, tm) * _cdiv(N, tn) == 1:
        rN = _round_up(N, 128)
        rM = _round_up(M, 8)
        if rN >= 256:
            tn = _round_up(rN // 2, 128)
        elif rM >= 16:
            tm = _round_up(rM // 2, 8)

    Mp = _round_up(M, tm)
    Np = _round_up(N, tn)
    Kp = _round_up(K, tk)
    nm, nn, nk = Mp // tm, Np // tn, Kp // tk

    # Zero-padding x along K guarantees padded columns contribute 0 regardless
    # of how the (binarized) weight padding turns out.
    x_p = jnp.pad(x, ((0, Mp - M), (0, Kp - K)))

    if bias is None:
        b_bin = jnp.zeros((1, Np), jnp.float32)
    else:
        b_bin = jnp.pad(_binarize(bias).astype(jnp.float32), (0, Np - N))
        b_bin = b_bin.reshape(1, Np)

    # Weight handling (see header): fuse binarization in-kernel when W is
    # streamed at most twice; otherwise pre-binarize to a transposed bf16
    # (Kp, Np) array in a single fused XLA pass.
    fuse = nm <= 2
    if fuse:
        w_in = jnp.pad(weight, ((0, Np - N), (0, Kp - K)))
        kernel = functools.partial(_binary_matmul_fused_kernel, nk=nk)
        w_spec = pl.BlockSpec((tn, tk), lambda i, j, k: (j, k))
        w_bytes = 4
    else:
        w_bin_t = _binarize(weight).astype(jnp.bfloat16).T           # (K, N)
        w_in = jnp.pad(w_bin_t, ((0, Kp - K), (0, Np - N)))
        kernel = functools.partial(_binary_matmul_prebin_kernel, nk=nk)
        w_spec = pl.BlockSpec((tk, tn), lambda i, j, k: (k, j))
        w_bytes = 2

    out_p = pl.pallas_call(
        kernel,
        out_shape=jax.ShapeDtypeStruct((Mp, Np), jnp.float32),
        grid=(nm, nn, nk),
        in_specs=[
            pl.BlockSpec((tm, tk), lambda i, j, k: (i, k)),   # x
            w_spec,                                           # weight
            pl.BlockSpec((1, tn), lambda i, j, k: (0, j)),    # binarized bias
        ],
        out_specs=pl.BlockSpec((tm, tn), lambda i, j, k: (i, j)),
        compiler_params=pltpu.CompilerParams(
            dimension_semantics=("parallel", "parallel", "arbitrary"),
            vmem_limit_bytes=_vmem_limit_bytes(tm, tn, tk, w_bytes),
        ),
    )(x_p, w_in, b_bin)

    return out_p[:M, :N]


# --------------------------------------------------------------------------
# Reference (original clamp/round formulation) + demo
# --------------------------------------------------------------------------
def _binary_tanh_ref(v):
    hs = jnp.clip((v + 1.0) * 0.5, 0.0, 1.0)
    return 2.0 * jnp.round(hs) - 1.0


def _reference(x, weight, bias):
    y = jnp.matmul(x, _binary_tanh_ref(weight).T,
                   precision=jax.lax.Precision.HIGHEST)
    if bias is not None:
        y = y + _binary_tanh_ref(bias)
    return y


if __name__ == "__main__":
    key = jax.random.PRNGKey(0)

    def make_case(k, m, kk, n):
        kx, kw, kb = jax.random.split(k, 3)
        x = jax.random.normal(kx, (m, kk), dtype=jnp.float32)
        # weight ~ N(0, 0.01)  (self.linear.weight.data.normal_(0, 0.01))
        w = 0.01 * jax.random.normal(kw, (n, kk), dtype=jnp.float32)
        # bias ~ U(-1/sqrt(in), 1/sqrt(in))  (nn.Linear default init)
        bound = 1.0 / (kk ** 0.5)
        b = jax.random.uniform(kb, (n,), dtype=jnp.float32,
                               minval=-bound, maxval=bound)
        return x, w, b

    k1, k2, k3 = jax.random.split(key, 3)

    # 1) Module-sized case: batch=8, in_features=32, out_features=16
    #    (fused in-kernel binarization, single K step, single grid cell).
    x, w, b = make_case(k1, 8, 32, 16)
    out = jax.block_until_ready(binary_linear(x, w, b))
    assert out.shape == (8, 16)
    assert jnp.allclose(out, _reference(x, w, b), atol=1e-5, rtol=1e-5), "case 1"

    # 2) Pre-binarized bf16-weight path (weight re-streamed > 2x).
    x, w, b = make_case(k2, 320, 384, 256)
    out = jax.block_until_ready(binary_linear(x, w, b, tm_cap=64))
    assert jnp.allclose(out, _reference(x, w, b), atol=2e-4, rtol=2e-5), "case 2"

    # 3) Multi-step K accumulation directly into the output block
    #    (+ megacore split of the N tile).
    x, w, b = make_case(k3, 256, 640, 256)
    out = jax.block_until_ready(binary_linear(x, w, b, tk_cap=256))
    assert jnp.allclose(out, _reference(x, w, b), atol=2e-4, rtol=2e-5), "case 3"

    print("KERNEL_OK")
</pallas_src>

<mosaic_0001>
module attributes {stable_mosaic.version = 11 : i64} {
  func.func @_binary_matmul_fused_kernel(%arg0: i32, %arg1: i32, %arg2: i32, %arg3: memref<8x128xf32, #tpu.memory_space<vmem>>, %arg4: memref<128x128xf32, #tpu.memory_space<vmem>>, %arg5: memref<1x128xf32, #tpu.memory_space<vmem>>, %arg6: memref<8x128xf32, #tpu.memory_space<vmem>>) attributes {dimension_semantics = [#tpu.dimension_semantics<parallel>, #tpu.dimension_semantics<parallel>, #tpu.dimension_semantics<arbitrary>], iteration_bounds = array<i64: 1, 1, 1>, scalar_prefetch = 0 : i64, scratch_operands = 0 : i64, tpu.core_type = #tpu.core_type<tc>, window_params = [{transform_indices = @transform_0, window_bounds = array<i64: 8, 128>}, {transform_indices = @transform_1, window_bounds = array<i64: 128, 128>}, {transform_indices = @transform_2, window_bounds = array<i64: 1, 128>}, {transform_indices = @transform_3, window_bounds = array<i64: 8, 128>}]} {
    %c0 = arith.constant 0 : index
    %c0_0 = arith.constant 0 : index
    %0 = vector.load %arg4[%c0, %c0_0] : memref<128x128xf32, #tpu.memory_space<vmem>>, vector<128x128xf32>
    %cst = arith.constant 1.000000e+00 : f32
    %1 = vector.broadcast %cst : f32 to vector<128x128xf32>
    %2 = arith.addf %0, %1 : vector<128x128xf32>
    %cst_1 = arith.constant 1.000000e+00 : f32
    %3 = vector.broadcast %cst_1 : f32 to vector<128x128xf32>
    %4 = arith.cmpf ogt, %2, %3 : vector<128x128xf32>
    %cst_2 = arith.constant 1.000000e+00 : f32
    %cst_3 = arith.constant -1.000000e+00 : f32
    %5 = vector.broadcast %cst_2 : f32 to vector<128x128xf32>
    %6 = vector.broadcast %cst_3 : f32 to vector<128x128xf32>
    %7 = arith.select %4, %5, %6 : vector<128x128xi1>, vector<128x128xf32>
    %c0_4 = arith.constant 0 : index
    %c0_5 = arith.constant 0 : index
    %8 = vector.load %arg3[%c0_4, %c0_5] : memref<8x128xf32, #tpu.memory_space<vmem>>, vector<8x128xf32>
    %cst_6 = arith.constant dense<0.000000e+00> : vector<8x128xf32>
    %9 = tpu.matmul %8, %7, %cst_6 {dimension_numbers = #tpu.dot_dimension_numbers<[1], [1], [0], [0], [0, 0, 1, 0], [], []>} : vector<8x128xf32>, vector<128x128xf32>, vector<8x128xf32> -> vector<8x128xf32>
    %c0_7 = arith.constant 0 : index
    %c0_8 = arith.constant 0 : index
    %10 = vector.load %arg5[%c0_7, %c0_8] : memref<1x128xf32, #tpu.memory_space<vmem>>, vector<1x128xf32>
    %11 = vector.broadcast %10 : vector<1x128xf32> to vector<8x128xf32>
    %12 = arith.addf %9, %11 : vector<8x128xf32>
    %c0_9 = arith.constant 0 : index
    %c0_10 = arith.constant 0 : index
    %13 = vector.load %arg6[%c0_9, %c0_10] : memref<8x128xf32, #tpu.memory_space<vmem>>, vector<8x128xf32>
    tpu.vector_store %arg6[%c0_9, %c0_10], %12 {strides = array<i32>} : memref<8x128xf32, #tpu.memory_space<vmem>>, vector<8x128xf32>,
    return
  }
  func.func @transform_0(%arg0: i32, %arg1: i32, %arg2: i32) -> (i32, i32) {
    %c0_i32 = arith.constant 0 : i32
    return %arg0, %arg2 : i32, i32
  }
  func.func @transform_1(%arg0: i32, %arg1: i32, %arg2: i32) -> (i32, i32) {
    %c0_i32 = arith.constant 0 : i32
    return %arg1, %arg2 : i32, i32
  }
  func.func @transform_2(%arg0: i32, %arg1: i32, %arg2: i32) -> (i32, i32) {
    %c0_i32 = arith.constant 0 : i32
    %c0_i32_0 = arith.constant 0 : i32
    return %c0_i32, %arg1 : i32, i32
  }
  func.func @transform_3(%arg0: i32, %arg1: i32, %arg2: i32) -> (i32, i32) {
    %c0_i32 = arith.constant 0 : i32
    return %arg0, %arg1 : i32, i32
  }
}

</mosaic_0001>

<bundles_post_ra>
// kernel: binary_linear.1
= control target key start
LH: loop header
LB: loop body
LE: loop exit
PB: predicated region body
PF: predicated region fallthrough
CT: control target
= control target key end

     0   :  { %v278_v3 = vmov 0.0|0.0   ;;  %v279_v9 = vmov -1.0   ;;  %s393_s0 = inlined_call_operand.vmem [shape: f32[8,128], index: 0, kind: input, shape index: {}]   ;;  %s394_s1 = inlined_call_operand.vmem [shape: f32[128,128], index: 1, kind: input, shape index: {}]   ;;  %s395_s2 = inlined_call_operand.vmem [shape: f32[1,128], index: 2, kind: input, shape index: {}]   ;;  %s396_s3 = inlined_call_operand.hbm [shape: f32[8,128], index: 3, kind: output, shape index: {}]  }
   0x1   :  { %v15_v0 = vld [vmem:[%s394_s1] sm:$0xff]  ;;  %v16_v1 = vld [vmem:[%s394_s1 + $0x8] sm:$0xff]  ;;  %v17_v2 = vld [vmem:[%s394_s1 + $0x10] sm:$0xff]  ;;  %225 = vmatprep.subr.bf16.mxu0 %v278_v3 }
   0x2   :  { %v31_v4 = vadd.f32 1.0, %v15_v0  ;;  %v32_v5 = vadd.f32 1.0, %v16_v1  ;;  %v18_v6 = vld [vmem:[%s394_s1 + $0x18] sm:$0xff]  ;;  %v33_v7 = vadd.f32 1.0, %v17_v2  ;;  %v19_v13 = vld [vmem:[%s394_s1 + $0x20] sm:$0xff]  ;;  %v20_v14 = vld [vmem:[%s394_s1 + $0x28] sm:$0xff] }
   0x3   :  { %v34_v8 = vadd.f32 1.0, %v18_v6 }
   0x4   :  { %vm47_vm0 = vcmp.gt.f32.partialorder %v31_v4, 1.0  ;;  %vm48_vm1 = vcmp.gt.f32.partialorder %v32_v5, 1.0  ;;  %vm49_vm2 = vcmp.gt.f32.partialorder %v33_v7, 1.0 }
   0x5   :  { %v63_v10 = vsel %vm47_vm0, 1.0, %v279_v9  ;;  %v64_v11 = vsel %vm48_vm1, 1.0, %v279_v9  ;;  %vm50_vm3 = vcmp.gt.f32.partialorder %v34_v8, 1.0 }
   0x6   :  { %v226_v12 = vpack.c.bf16 %v64_v11, %v63_v10 }
   0x8   :  { %227 = vmatpush3.bf16.xpose.msra.mxu0 %v226_v12 }
   0x9   :  { %8 = vsyncpa [#allocation3], 0  ;;  %228 = vmatprep.subr.bf16.mxu0 %v278_v3  ;;  %v65_v15 = vsel %vm49_vm2, 1.0, %v279_v9  ;;  %v66_v16 = vsel %vm50_vm3, 1.0, %v279_v9  ;;  %v35_v17 = vadd.f32 1.0, %v19_v13  ;;  %v36_v18 = vadd.f32 1.0, %v20_v14 }
   0xa   :  { %v229_v19 = vpack.c.bf16 %v66_v16, %v65_v15  ;;  %v21_v20 = vld [vmem:[%s394_s1 + $0x30] sm:$0xff]  ;;  %v22_v21 = vld [vmem:[%s394_s1 + $0x38] sm:$0xff]  ;;  %vm280_vm6 = vmmov 0   ;;  %v281_v22 = vmov 0.0   ;;  %v23_v28 = vld [vmem:[%s394_s1 + $0x40] sm:$0xff]  ;;  %s282_s20 = smov [#allocation2]  }
   0xb   :  { %vm51_vm4 = vcmp.gt.f32.partialorder %v35_v17, 1.0  ;;  %vm52_vm5 = vcmp.gt.f32.partialorder %v36_v18, 1.0  ;;  %222 = vmatprep.mubr.msk.f32.mxu0 %vm280_vm6, %v281_v22  ;;  %v37_v25 = vadd.f32 1.0, %v21_v20  ;;  %v38_v26 = vadd.f32 1.0, %v22_v21  ;;  %v24_v29 = vld [vmem:[%s394_s1 + $0x48] sm:$0xff]  ;;  %v25_v35 = vld [vmem:[%s394_s1 + $0x50] sm:$0xff] }
   0xc   :  { %v67_v23 = vsel %vm51_vm4, 1.0, %v279_v9  ;;  %v68_v24 = vsel %vm52_vm5, 1.0, %v279_v9  ;;  %v39_v32 = vadd.f32 1.0, %v23_v28  ;;  %v40_v33 = vadd.f32 1.0, %v24_v29  ;;  %v26_v36 = vld [vmem:[%s394_s1 + $0x58] sm:$0xff]  ;;  %v27_v42 = vld [vmem:[%s394_s1 + $0x60] sm:$0xff] }
   0xd   :  { %v232_v27 = vpack.c.bf16 %v68_v24, %v67_v23  ;;  %vm53_vm7 = vcmp.gt.f32.partialorder %v37_v25, 1.0  ;;  %vm54_vm8 = vcmp.gt.f32.partialorder %v38_v26, 1.0  ;;  %v41_v39 = vadd.f32 1.0, %v25_v35  ;;  %v28_v43 = vld [vmem:[%s394_s1 + $0x68] sm:$0xff]  ;;  %v29_v49 = vld [vmem:[%s394_s1 + $0x70] sm:$0xff]  ;;  %v30_v50 = vld [vmem:[%s394_s1 + $0x78] sm:$0xff] }
   0xe   :  { %v69_v30 = vsel %vm53_vm7, 1.0, %v279_v9  ;;  %v70_v31 = vsel %vm54_vm8, 1.0, %v279_v9  ;;  %vm55_vm9 = vcmp.gt.f32.partialorder %v39_v32, 1.0  ;;  %vm56_vm10 = vcmp.gt.f32.partialorder %v40_v33, 1.0  ;;  %v79_v59 = vld [vmem:[%s393_s0] sm:$0xff]  ;;  %s164_s21 = sshll.u32 %s282_s20, 4  ;;  %s165_s21 = int_to_ptr.vmem [resolvable:$true] %s164_s21 }
   0xf   :  { %v235_v34 = vpack.c.bf16 %v70_v31, %v69_v30  ;;  %v71_v37 = vsel %vm55_vm9, 1.0, %v279_v9  ;;  %v72_v38 = vsel %vm56_vm10, 1.0, %v279_v9  ;;  %v42_v40 = vadd.f32 1.0, %v26_v36  ;;  %v172_v60 = vld [vmem:[%s395_s2] ss:$0 sm:$0xff]  ;;  %s254_s22 = scalar_lea.vmem %s165_s21, 128  ;;  %p259_p1 = scmp.lt.s32.totalorder %s165_s21, %s165_s21 }
  0x10   :  { %230 = vmatpush3.bf16.xpose.msra.mxu0 %v229_v19  ;;  %v238_v41 = vpack.c.bf16 %v72_v38, %v71_v37  ;;  %vm57_vm11 = vcmp.gt.f32.partialorder %v41_v39, 1.0  ;;  %v43_v46 = vadd.f32 1.0, %v27_v42  ;;  %v44_v47 = vadd.f32 1.0, %v28_v43  ;;  %p255_p0 = scmp.ne.s32.totalorder %s165_s21, %s254_s22  ;;  %p260_p2 = scmp.lt.s32.totalorder %s254_s22, %s254_s22 }
  0x11   :  { %231 = vmatprep.subr.bf16.mxu0 %v278_v3  ;;  %vm58_vm12 = vcmp.gt.f32.partialorder %v42_v40, 1.0  ;;  %v73_v44 = vsel %vm57_vm11, 1.0, %v279_v9  ;;  %v45_v53 = vadd.f32 1.0, %v29_v49  ;;  %v46_v54 = vadd.f32 1.0, %v30_v50 }
  0x12   :  { %v74_v45 = vsel %vm58_vm12, 1.0, %v279_v9  ;;  %vm59_vm13 = vcmp.gt.f32.partialorder %v43_v46, 1.0  ;;  %vm60_vm14 = vcmp.gt.f32.partialorder %v44_v47, 1.0  ;;  %p261_p3 = por %p260_p2, %p259_p1 }
  0x13   :  { %v241_v48 = vpack.c.bf16 %v74_v45, %v73_v44  ;;  %v75_v51 = vsel %vm59_vm13, 1.0, %v279_v9  ;;  %v76_v52 = vsel %vm60_vm14, 1.0, %v279_v9  ;;  %vm61_vm15 = vcmp.gt.f32.partialorder %v45_v53, 1.0 }
  0x14   :  { %v244_v55 = vpack.c.bf16 %v76_v52, %v75_v51  ;;  %vm62_vm0 = vcmp.gt.f32.partialorder %v46_v54, 1.0  ;;  %v77_v56 = vsel %vm61_vm15, 1.0, %v279_v9  ;;  %p262_p4 = pnand %p261_p3, %p255_p0 }
  0x15   :  { %v78_v57 = vsel %vm62_vm0, 1.0, %v279_v9 }
  0x16   :  { %v247_v58 = vpack.c.bf16 %v78_v57, %v77_v56 }
  0x18   :  { %233 = vmatpush3.bf16.xpose.msra.mxu0 %v232_v27 }
  0x19   :  { %234 = vmatprep.subr.bf16.mxu0 %v278_v3 }
  0x20   :  { %236 = vmatpush3.bf16.xpose.msra.mxu0 %v235_v34 }
  0x21   :  { %237 = vmatprep.subr.bf16.mxu0 %v278_v3 }
  0x28   :  { %239 = vmatpush3.bf16.xpose.msra.mxu0 %v238_v41 }
  0x29   :  { %240 = vmatprep.subr.bf16.mxu0 %v278_v3 }
  0x30   :  { %242 = vmatpush3.bf16.xpose.msra.mxu0 %v241_v48 }
  0x31   :  { %243 = vmatprep.subr.bf16.mxu0 %v278_v3 }
  0x38   :  { %245 = vmatpush3.bf16.xpose.msra.mxu0 %v244_v55 }
  0x39   :  { %246 = vmatprep.subr.bf16.mxu0 %v278_v3 }
  0x40   :  { %248 = vmatpush3.bf16.xpose.msra.mxu0 %v247_v58 }
  0x47   :  { %223 = vmatmul.mubr.f32.vlgmr.msra.gmra.mrb[0].mxu0 %v79_v59 }
 0x11a   :  { %v153_v61 = vpop.f32.mrb[0].mxu0 }
 0x11b   :  { %v154_v62 = vadd.f32 %v172_v60, %v153_v61  ;;  %v224_v63 = vpop.f32.mrb[1].mxu0 }
 0x11d   :  { %157 = vst [vmem:[#allocation2] sm:$0xff] %v154_v62 }
 0x11e   :  { %265 = shalt.err (!%p262_p4)
}
 0x11f   :  { %s266_s24 = scalar_lea.hbm %s396_s3, 128 }
 0x120   :  { %p267_p5 = scmp.ne.s32.totalorder %s396_s3, %s266_s24  ;;  %p270_p6 = scmp.lt.u32.totalorder %s266_s24, %s396_s3 }
 0x122   :  { %p272_p7 = pnand %p270_p6, %p267_p5 }
 0x124   :  { %275 = shalt.err (!%p272_p7)
}
 0x125   :  { %167 = dma.vmem_to_hbm [thread:$0]  %s165_s21, 128, %s396_s3, [#allocation3]  }
 0x126   :  { %276 = dma.done.wait [#allocation3], 128  }
 0x127   :  { %277 = vsyncadd [#allocation3], 4294967168 }
 0x128   :  { %171 = vsyncpa [#allocation3], 1 }

</bundles_post_ra>
